<compile_context>
chip_gen: v5e
topology: v5e:2x2
jax: 0.10.0
libtpu: 0.0.40
codegen_flags: <defaults>
</compile_context>

<pallas_src>
import jax
import jax.numpy as jnp
from jax import lax
from jax.experimental import pallas as pl
from jax.experimental.pallas import tpu as pltpu


def _round_up(x, m):
    return ((x + m - 1) // m) * m


def baseline_gather_mean_kernel(tok_ref, scores_ref, b_ref, out_ref):
    # tok_ref:    (S*B, 1) int32  VMEM  flattened token ids, row i = s*B + b
    # scores_ref: (1, Vp)  f32    VMEM  folded per-vocab scores, V padded to 128 lanes
    # b_ref:      (1,)     f32    SMEM  Linear bias (scalar)
    # out_ref:    (1, B)   f32    VMEM  lane-dense output row (batch on lanes)
    SB = tok_ref.shape[0]
    Vp = scores_ref.shape[1]
    B = out_ref.shape[1]
    S = SB // B

    tok = tok_ref[...]                                                    # (SB, 1)

    # 1) Flattened 2D one-hot "gather": vocab on lanes, tokens on sublanes.
    vocab_iota = lax.broadcasted_iota(jnp.int32, (SB, Vp), 1)             # (SB, Vp)
    picked = jnp.where(tok == vocab_iota, scores_ref[...], 0.0)           # (SB, Vp)
    per_token = jnp.sum(picked, axis=1, keepdims=True)                    # (SB, 1)

    # 2) Sequence mean per batch column without any in-kernel reshape:
    #    route row i to output column i % B, then reduce over sublanes.
    row = lax.broadcasted_iota(jnp.int32, (SB, B), 0)
    col = lax.broadcasted_iota(jnp.int32, (SB, B), 1)
    sel = (row % B) == col                                                # (SB, B)
    batch_sum = jnp.sum(jnp.where(sel, per_token, 0.0),
                        axis=0, keepdims=True)                            # (1, B)

    # 3) Mean + bias, lane-dense store.
    out_ref[...] = batch_sum * (1.0 / S) + b_ref[0]


def baseline_forward(x_tokens, emb_table, fc_w, fc_b):
    """x_tokens: (S, B) int; emb_table: (V, E) f32; fc_w: (E, 1) f32; fc_b: (1,) f32."""
    S, B = x_tokens.shape
    V, E = emb_table.shape
    Vp = _round_up(V, 128)

    # Init-time fold of the Linear layer into the embedding table (linearity:
    # mean and dot commute).  Tiny (V,E)@(E,1) matvec; removes the per-call
    # table transpose and cuts kernel HBM input by a factor of E.
    scores = (emb_table @ fc_w).reshape(1, V)
    scores = jnp.pad(scores, ((0, 0), (0, Vp - V)))                       # (1, Vp)

    tok_flat = x_tokens.reshape(S * B, 1).astype(jnp.int32)               # (S*B, 1)
    bias = fc_b.reshape(1)

    out = pl.pallas_call(
        baseline_gather_mean_kernel,
        out_shape=jax.ShapeDtypeStruct((1, B), jnp.float32),
        in_specs=[
            pl.BlockSpec((S * B, 1), lambda: (0, 0)),                     # token ids
            pl.BlockSpec((1, Vp), lambda: (0, 0)),                        # scores
            pl.BlockSpec(memory_space=pltpu.MemorySpace.SMEM),            # bias
        ],
        out_specs=pl.BlockSpec((1, B), lambda: (0, 0)),
    )(tok_flat, scores, bias)
    return out[0]                                                         # (B,)


if __name__ == "__main__":
    # Small, deterministic synthetic setup consistent with the module.
    vocab_size = 100
    embedding_dim = 32
    seq_len = 8
    batch = 2

    key = jax.random.PRNGKey(0)
    k_vocab, k_w, k_b, k_x = jax.random.split(key, 4)

    # Deterministic "pretrained" embedding table and Linear(E, 1) params.
    emb_table = jax.random.normal(k_vocab, (vocab_size, embedding_dim),
                                  dtype=jnp.float32)
    fc_w = (jax.random.normal(k_w, (embedding_dim, 1), dtype=jnp.float32)
            * (1.0 / jnp.sqrt(embedding_dim)))
    fc_b = jax.random.normal(k_b, (1,), dtype=jnp.float32) * 0.01

    # Token ids, PyTorch convention: x has shape (seq_len, batch).
    x_tokens = jax.random.randint(k_x, (seq_len, batch), 0, vocab_size,
                                  dtype=jnp.int32)

    out = baseline_forward(x_tokens, emb_table, fc_w, fc_b)
    out = jax.block_until_ready(out)

    # Pure-JAX reference of the original (mean-then-linear) forward pass.
    ref = (jnp.take(emb_table, x_tokens, axis=0).mean(0) @ fc_w + fc_b)[:, 0]
    assert out.shape == (batch,)
    assert jnp.allclose(out, ref, atol=1e-4, rtol=1e-4)

    print("KERNEL_OK")
</pallas_src>

<mosaic_0001>
module attributes {stable_mosaic.version = 11 : i64} {
  func.func @baseline_gather_mean_kernel(%arg0: memref<16x1xi32, #tpu.memory_space<vmem>>, %arg1: memref<1x128xf32, #tpu.memory_space<vmem>>, %arg2: memref<1xf32, #tpu.memory_space<smem>>, %arg3: memref<1x2xf32, #tpu.memory_space<vmem>>) attributes {dimension_semantics = [], scalar_prefetch = 0 : i64, scratch_operands = 0 : i64, tpu.core_type = #tpu.core_type<tc>} {
    %c0 = arith.constant 0 : index
    %c0_0 = arith.constant 0 : index
    %0 = vector.load %arg0[%c0, %c0_0] : memref<16x1xi32, #tpu.memory_space<vmem>>, vector<16x1xi32>
    %1 = tpu.iota {dimensions = array<i32: 1>} : vector<16x128xi32>
    %2 = vector.broadcast %0 : vector<16x1xi32> to vector<16x128xi32>
    %3 = arith.cmpi eq, %2, %1 : vector<16x128xi32>
    %c0_1 = arith.constant 0 : index
    %c0_2 = arith.constant 0 : index
    %4 = vector.load %arg1[%c0_1, %c0_2] : memref<1x128xf32, #tpu.memory_space<vmem>>, vector<1x128xf32>
    %cst = arith.constant 0.000000e+00 : f32
    %5 = vector.shape_cast %4 : vector<1x128xf32> to vector<1x128xf32>
    %6 = vector.broadcast %5 : vector<1x128xf32> to vector<16x128xf32>
    %7 = vector.broadcast %cst : f32 to vector<16x128xf32>
    %8 = arith.select %3, %6, %7 : vector<16x128xi1>, vector<16x128xf32>
    %cst_3 = arith.constant dense<0.000000e+00> : vector<16xf32>
    %9 = vector.multi_reduction <add>, %8, %cst_3 [1] : vector<16x128xf32> to vector<16xf32>
    %10 = vector.shape_cast %9 : vector<16xf32> to vector<16x1xf32>
    %11 = tpu.iota {dimensions = array<i32: 0>} : vector<16x2xi32>
    %12 = tpu.iota {dimensions = array<i32: 1>} : vector<16x2xi32>
    %c2_i32 = arith.constant 2 : i32
    %c0_i32 = arith.constant 0 : i32
    %13 = arith.cmpi eq, %c2_i32, %c0_i32 : i32
    %c1_i32 = arith.constant 1 : i32
    %14 = arith.select %13, %c1_i32, %c2_i32 : i32
    %15 = vector.broadcast %14 : i32 to vector<16x2xi32>
    %16 = arith.remsi %11, %15 : vector<16x2xi32>
    %c0_i32_4 = arith.constant 0 : i32
    %17 = vector.broadcast %c0_i32_4 : i32 to vector<16x2xi32>
    %18 = arith.cmpi ne, %16, %17 : vector<16x2xi32>
    %c0_i32_5 = arith.constant 0 : i32
    %19 = vector.broadcast %c0_i32_5 : i32 to vector<16x2xi32>
    %20 = arith.cmpi slt, %16, %19 : vector<16x2xi32>
    %c0_i32_6 = arith.constant 0 : i32
    %21 = arith.cmpi slt, %14, %c0_i32_6 : i32
    %22 = vector.broadcast %21 : i1 to vector<16x2xi1>
    %23 = vector.broadcast %22 : vector<16x2xi1> to vector<16x2xi1>
    %24 = arith.xori %20, %23 : vector<16x2xi1>
    %25 = arith.andi %24, %18 : vector<16x2xi1>
    %26 = vector.broadcast %14 : i32 to vector<16x2xi32>
    %27 = arith.addi %16, %26 : vector<16x2xi32>
    %28 = arith.select %25, %27, %16 : vector<16x2xi1>, vector<16x2xi32>
    %29 = arith.cmpi eq, %28, %12 : vector<16x2xi32>
    %cst_7 = arith.constant 0.000000e+00 : f32
    %30 = vector.shape_cast %10 : vector<16x1xf32> to vector<16x1xf32>
    %31 = vector.broadcast %30 : vector<16x1xf32> to vector<16x2xf32>
    %32 = vector.broadcast %cst_7 : f32 to vector<16x2xf32>
    %33 = arith.select %29, %31, %32 : vector<16x2xi1>, vector<16x2xf32>
    %cst_8 = arith.constant dense<0.000000e+00> : vector<2xf32>
    %34 = vector.multi_reduction <add>, %33, %cst_8 [0] : vector<16x2xf32> to vector<2xf32>
    %35 = vector.shape_cast %34 : vector<2xf32> to vector<1x2xf32>
    %cst_9 = arith.constant 1.250000e-01 : f32
    %36 = vector.broadcast %cst_9 : f32 to vector<1x2xf32>
    %37 = arith.mulf %35, %36 : vector<1x2xf32>
    %c0_10 = arith.constant 0 : index
    %38 = memref.load %arg2[%c0_10] : memref<1xf32, #tpu.memory_space<smem>>
    %39 = vector.broadcast %38 : f32 to vector<1x2xf32>
    %40 = arith.addf %37, %39 : vector<1x2xf32>
    %c0_11 = arith.constant 0 : index
    %c0_12 = arith.constant 0 : index
    %41 = vector.load %arg3[%c0_11, %c0_12] : memref<1x2xf32, #tpu.memory_space<vmem>>, vector<1x2xf32>
    tpu.vector_store %arg3[%c0_11, %c0_12], %40 {strides = array<i32>} : memref<1x2xf32, #tpu.memory_space<vmem>>, vector<1x2xf32>,
    return
  }
}

</mosaic_0001>

<bundles_post_ra>
// kernel: tpu_custom_call.1
= control target key start
LH: loop header
LB: loop body
LE: loop exit
PB: predicated region body
PF: predicated region fallthrough
CT: control target
= control target key end

     0   :  { %v131_v1 = vmov 0   ;;  %s168_s0 = inlined_call_operand.vmem [shape: s32[16,1], index: 0, kind: input, shape index: {}]   ;;  %s169_s1 = inlined_call_operand.vmem [shape: f32[1,128], index: 1, kind: input, shape index: {}]   ;;  %s170_s2 = inlined_call_operand.<no memory space> [shape: f32[1], index: 2, kind: input, shape index: {}]   ;;  %s171_s3 = inlined_call_operand.hbm [shape: f32[1,2], index: 3, kind: output, shape index: {}]  }
   0x1   :  { %v16_v0 = vld [vmem:[%s168_s0] sm:$0xff]  ;;  %103 = vset.pattern.permute.xlu0 %v131_v1 }
   0x2   :  { %9 = vsyncpa [#allocation4], 0  ;;  %21 = vperm.xlu0 %103, %v16_v0   ;;  %v17_v2 = vld [vmem:[%s168_s0 + $0x8] sm:$0xff]  ;;  %v18_v3 = vlaneseq  ;;  %v104_v5 = vld [vmem:[%s169_s1] ss:$0 sm:$0xff]  ;;  %vm69_vm4 = vcmask 15360   ;;  %v81_v27 = vstv %s170_s2 }
   0x3   :  { %s132_s18 = smov [#allocation3]   ;;  %s92_s22 = sshll.u32 %s171_s3, 4  ;;  %vm83_vm5 = vcmask 8192   ;;  %s93_s22 = int_to_ptr.hbm [resolvable:$true] %s92_s22 }
   0x4   :  { %v19_v4 = vand.u32 127, %v18_v3  ;;  %v39_v10 = vshrl.u32 %v18_v3, 7  ;;  %s90_s19 = sshll.u32 %s132_s18, 4  ;;  %s91_s19 = int_to_ptr.vmem [resolvable:$true] %s90_s19 }
   0x6   :  { %v40_v11 = vadd.s32 8, %v39_v10  ;;  %v45_v12 = vand.u32 1, %v39_v10 }
   0x8   :  { %v52_v14 = vand.u32 1, %v40_v11  ;;  %vm65_vm2 = vcmp.eq.s32.totalorder %v45_v12, %v19_v4 }
   0xa   :  { %24 = vperm.xlu0 %103, %v17_v2   ;;  %vm66_vm3 = vcmp.eq.s32.totalorder %v52_v14, %v19_v4 }
  0x74   :  { %v22_v6 = vpop.permute.xlu0 %21 }
  0x75   :  { %vm26_vm0 = vcmp.eq.s32.totalorder %v22_v6, %v19_v4 }
  0x76   :  { %v32_v7 = vsel %vm26_vm0, %v104_v5, 0.0 }
  0x77   :  { %34 = vadd.xlane.f32.xlu1 %v32_v7 }
  0x7c   :  { %v25_v8 = vpop.permute.xlu0 %24 }
  0x7d   :  { %vm27_vm1 = vcmp.eq.s32.totalorder %v25_v8, %v19_v4 }
  0x7e   :  { %v33_v9 = vsel %vm27_vm1, %v104_v5, 0.0 }
  0x7f   :  { %36 = vadd.xlane.f32.xlu1 %v33_v9 }
  0xea   :  { %v35_v13 = vpop.xlane.xlu1 %34 }
  0xeb   :  { %v67_v15 = vsel %vm65_vm2, %v35_v13, 0.0 }
  0xec   :  { %v70_v18 = vsel %vm69_vm4, %v67_v15, 0.0 }
  0xf2   :  { %v37_v16 = vpop.xlane.xlu1 %36 }
  0xf3   :  { %v68_v17 = vsel %vm66_vm3, %v37_v16, 0.0 }
  0xf4   :  { %v71_v19 = vsel %vm69_vm4, %v68_v17, 0.0 }
  0xf5   :  { %v72_v20 = vadd.f32 %v71_v19, %v70_v18 }
  0xf7   :  { %v73_v21 = vrot.slane %v72_v20, 4 }
  0xf9   :  { %v74_v22 = vadd.f32 %v73_v21, %v72_v20 }
  0xfb   :  { %v75_v23 = vrot.slane %v74_v22, 2 }
  0xfd   :  { %v76_v24 = vadd.f32 %v75_v23, %v74_v22 }
  0xff   :  { %v77_v25 = vrot.slane %v76_v24, 1 }
 0x101   :  { %v78_v26 = vadd.f32 %v77_v25, %v76_v24 }
 0x103   :  { %v79_v28 = vmul.f32 0.125, %v78_v26 }
 0x105   :  { %v82_v29 = vadd.f32 %v81_v27, %v79_v28 }
 0x107   :  { %84 = vst.msk [vmem:[#allocation3] sm:$0x1] %vm83_vm5, %v82_v29 }
 0x108   :  { %95 = dma.vmem_to_hbm [thread:$0]  %s91_s19, 16, %s93_s22, [#allocation4]  }
 0x109   :  { %129 = dma.done.wait [#allocation4], 16  }
 0x10a   :  { %130 = vsyncadd [#allocation4], 4294967280 }
 0x10b   :  { %100 = vsyncpa [#allocation4], 1 }

</bundles_post_ra>
